<compile_context>
chip_gen: v5e
topology: v5e:2x2
jax: 0.10.0
libtpu: 0.0.40
codegen_flags: <defaults>
</compile_context>

<pallas_src>
import functools

import jax
import jax.numpy as jnp
from jax.experimental import pallas as pl
from jax.experimental.pallas import tpu as pltpu

_LANE = 128


def _round_up(x, m):
    return ((x + m - 1) // m) * m


def _project_kernel(x_ref, wt_ref, xw_ref):
    """XW tile = X tile @ W^T.  W is passed pre-transposed as (F_in, F_pad)."""
    xw_ref[...] = jnp.dot(
        x_ref[...], wt_ref[...], preferred_element_type=jnp.float32
    ).astype(xw_ref.dtype)


def _sage_agg_kernel(adj_ref, xw_ref, inv_deg_ref, b_ref, o_ref, acc_ref):
    """out_tile = inv_deg * sum_k(adj_tile_k @ XW_k) + b + 0.01.

    adj_ref     : (tile_m, tile_k)   bf16 0/1 adjacency block
    xw_ref      : (tile_k, F_pad)    bf16 pre-projected features
    inv_deg_ref : (tile_m, 1)        f32  precomputed 1/deg (0 for deg==0)
    b_ref       : (1, F_pad)         f32  bias (zero-padded to lane width)
    o_ref       : (tile_m, F_pad)    f32  output tile (lane-dense)
    acc_ref     : (tile_m, F_pad)    f32  VMEM accumulator across K tiles
    """
    k = pl.program_id(1)

    @pl.when(k == 0)
    def _():
        acc_ref[...] = jnp.zeros_like(acc_ref)

    acc_ref[...] += jnp.dot(
        adj_ref[...], xw_ref[...], preferred_element_type=jnp.float32
    )

    @pl.when(k == pl.num_programs(1) - 1)
    def _():
        o_ref[...] = (
            acc_ref[...] * inv_deg_ref[...] + b_ref[...] + jnp.float32(0.01)
        ).astype(o_ref.dtype)


@functools.partial(
    jax.jit, static_argnames=("tile_m", "tile_k", "compute_dtype"))
def sage_conv(adj, x, w_neigh, b_neigh, *, tile_m=256, tile_k=512,
              compute_dtype=jnp.bfloat16):
    n_dst, n_src = adj.shape
    f_in = x.shape[1]
    f_out = w_neigh.shape[0]

    # Clamp tiles for small problems (keep TPU-friendly multiples).
    tile_m = min(tile_m, _round_up(n_dst, 16))
    tile_k = min(tile_k, _round_up(n_src, _LANE))

    f_pad = _round_up(f_out, _LANE)          # lane-dense output / weight slab
    n_dst_p = _round_up(n_dst, tile_m)
    n_src_p = _round_up(n_src, tile_k)

    # ---- wrapper-side (XLA) prep: pad, precompute inverse degree, transpose W ----
    deg = jnp.sum(adj.astype(jnp.float32), axis=1, keepdims=True)       # (n_dst, 1)
    inv_deg = jnp.where(deg > 0.0, 1.0 / deg, 0.0).astype(jnp.float32)
    inv_deg = jnp.pad(inv_deg, ((0, n_dst_p - n_dst), (0, 0)))

    adj_p = jnp.pad(adj, ((0, n_dst_p - n_dst), (0, n_src_p - n_src)))
    adj_p = adj_p.astype(compute_dtype)                                  # 0/1 exact
    x_p = jnp.pad(x, ((0, n_src_p - n_src), (0, 0))).astype(jnp.float32)
    wt_p = jnp.pad(w_neigh.T.astype(jnp.float32),
                   ((0, 0), (0, f_pad - f_out)))                         # (f_in, f_pad)
    b_p = jnp.pad(b_neigh.reshape(1, f_out).astype(jnp.float32),
                  ((0, 0), (0, f_pad - f_out)))                          # (1, f_pad)

    # ---- step 1: pre-project features  XW = X @ W^T  (lane-dense, bf16) ----
    xw = pl.pallas_call(
        _project_kernel,
        out_shape=jax.ShapeDtypeStruct((n_src_p, f_pad), compute_dtype),
        grid_spec=pltpu.PrefetchScalarGridSpec(
            num_scalar_prefetch=0,
            grid=(n_src_p // tile_k,),
            in_specs=[
                pl.BlockSpec((tile_k, f_in), lambda i: (i, 0)),
                pl.BlockSpec((f_in, f_pad), lambda i: (0, 0)),
            ],
            out_specs=pl.BlockSpec((tile_k, f_pad), lambda i: (i, 0)),
        ),
        compiler_params=pltpu.CompilerParams(
            dimension_semantics=("parallel",)),
    )(x_p, wt_p)

    # ---- step 2: streamed mean aggregation + epilogue ----
    adj_bytes = jnp.dtype(compute_dtype).itemsize
    vmem_bytes = (
        2 * tile_m * tile_k * adj_bytes      # adjacency, double-buffered
        + 2 * tile_k * f_pad * adj_bytes     # XW, double-buffered
        + 2 * tile_m * 4                     # inv_deg
        + 2 * f_pad * 4                      # bias
        + 2 * tile_m * f_pad * 4             # output, double-buffered
        + tile_m * f_pad * 4                 # f32 accumulator scratch
    )
    # Keep within v7x's smaller VMEM while leaving headroom on v5e/v6e.
    vmem_limit = min(max(2 * vmem_bytes, 32 * 1024 * 1024), 48 * 1024 * 1024)

    out_p = pl.pallas_call(
        _sage_agg_kernel,
        out_shape=jax.ShapeDtypeStruct((n_dst_p, f_pad), jnp.float32),
        grid_spec=pltpu.PrefetchScalarGridSpec(
            num_scalar_prefetch=0,
            grid=(n_dst_p // tile_m, n_src_p // tile_k),
            in_specs=[
                pl.BlockSpec((tile_m, tile_k), lambda i, k: (i, k)),   # adjacency
                pl.BlockSpec((tile_k, f_pad), lambda i, k: (k, 0)),    # XW
                pl.BlockSpec((tile_m, 1), lambda i, k: (i, 0)),        # inv_deg
                pl.BlockSpec((1, f_pad), lambda i, k: (0, 0)),         # bias
            ],
            out_specs=pl.BlockSpec((tile_m, f_pad), lambda i, k: (i, 0)),
            scratch_shapes=[pltpu.VMEM((tile_m, f_pad), jnp.float32)],
        ),
        compiler_params=pltpu.CompilerParams(
            dimension_semantics=("parallel", "arbitrary"),
            vmem_limit_bytes=vmem_limit),
    )(adj_p, xw, inv_deg, b_p)

    return out_p[:n_dst, :f_out]


def reference(adj, x, w_neigh, b_neigh):
    deg = jnp.sum(adj, axis=1, keepdims=True)
    h_neigh = jnp.where(deg > 0.0, (adj @ x) / deg, 0.0)
    return h_neigh @ w_neigh.T + b_neigh[None, :] + 0.01


if __name__ == "__main__":
    # Small synthetic problem: 128 nodes, in_feats=32, out_feats=32.
    N, F_IN, F_OUT = 128, 32, 32
    key = jax.random.PRNGKey(0)
    k_adj, k_x, k_w, k_b = jax.random.split(key, 4)

    # Deterministic random graph (dense 0/1 adjacency, ~30% density).
    adj = jax.random.bernoulli(k_adj, p=0.3, shape=(N, N)).astype(jnp.float32)
    x = jax.random.normal(k_x, (N, F_IN), dtype=jnp.float32)

    # fc_neigh params: xavier_uniform with gain = calculate_gain('relu') = sqrt(2),
    # bias ~ U(-1/sqrt(fan_in), 1/sqrt(fan_in)) like nn.Linear default.
    gain = jnp.sqrt(2.0)
    bound_w = gain * jnp.sqrt(6.0 / (F_IN + F_OUT))
    w_neigh = jax.random.uniform(k_w, (F_OUT, F_IN), jnp.float32, -bound_w, bound_w)
    bound_b = 1.0 / jnp.sqrt(F_IN)
    b_neigh = jax.random.uniform(k_b, (F_OUT,), jnp.float32, -bound_b, bound_b)

    out = sage_conv(adj, x, w_neigh, b_neigh)
    jax.block_until_ready(out)

    ref = reference(adj, x, w_neigh, b_neigh)
    assert out.shape == (N, F_OUT)
    # bf16 pre-projected features introduce ~0.4% relative error on XW;
    # accumulation is f32, so a 2e-2 absolute tolerance is comfortable.
    assert jnp.allclose(out, ref, atol=2e-2, rtol=2e-2), "mismatch vs reference"

    print("KERNEL_OK")
</pallas_src>

<mosaic_0001>
module attributes {stable_mosaic.version = 11 : i64} {
  func.func @_sage_agg_kernel(%arg0: i32, %arg1: i32, %arg2: memref<128x128xbf16, #tpu.memory_space<vmem>>, %arg3: memref<128x128xbf16, #tpu.memory_space<vmem>>, %arg4: memref<128x1xf32, #tpu.memory_space<vmem>>, %arg5: memref<1x128xf32, #tpu.memory_space<vmem>>, %arg6: memref<128x128xf32, #tpu.memory_space<vmem>>, %arg7: memref<128x128xf32, #tpu.memory_space<vmem>>) attributes {dimension_semantics = [#tpu.dimension_semantics<parallel>, #tpu.dimension_semantics<arbitrary>], iteration_bounds = array<i64: 1, 1>, scalar_prefetch = 0 : i64, scratch_operands = 1 : i64, tpu.core_type = #tpu.core_type<tc>, window_params = [{transform_indices = @transform_0, window_bounds = array<i64: 128, 128>}, {transform_indices = @transform_1, window_bounds = array<i64: 128, 128>}, {transform_indices = @transform_2, window_bounds = array<i64: 128, 1>}, {pipeline_mode = #tpu.pipeline_mode<synchronous>, transform_indices = @transform_3, window_bounds = array<i64: 1, 128>}, {transform_indices = @transform_4, window_bounds = array<i64: 128, 128>}]} {
    %c0_i32 = arith.constant 0 : i32
    %0 = arith.cmpi eq, %arg1, %c0_i32 : i32
    %1 = arith.extui %0 : i1 to i32
    %c0_i32_0 = arith.constant 0 : i32
    %2 = arith.cmpi ne, %1, %c0_i32_0 : i32
    scf.if %2 {
      %cst_10 = arith.constant 0.000000e+00 : f32
      %12 = vector.broadcast %cst_10 : f32 to vector<128x128xf32>
      %c0_11 = arith.constant 0 : index
      %c0_12 = arith.constant 0 : index
      %13 = vector.load %arg7[%c0_11, %c0_12] : memref<128x128xf32, #tpu.memory_space<vmem>>, vector<128x128xf32>
      tpu.vector_store %arg7[%c0_11, %c0_12], %12 {strides = array<i32>} : memref<128x128xf32, #tpu.memory_space<vmem>>, vector<128x128xf32>,
    } else {
    }
    %c0 = arith.constant 0 : index
    %c0_1 = arith.constant 0 : index
    %3 = vector.load %arg7[%c0, %c0_1] : memref<128x128xf32, #tpu.memory_space<vmem>>, vector<128x128xf32>
    %c0_2 = arith.constant 0 : index
    %c0_3 = arith.constant 0 : index
    %4 = vector.load %arg2[%c0_2, %c0_3] : memref<128x128xbf16, #tpu.memory_space<vmem>>, vector<128x128xbf16>
    %c0_4 = arith.constant 0 : index
    %c0_5 = arith.constant 0 : index
    %5 = vector.load %arg3[%c0_4, %c0_5] : memref<128x128xbf16, #tpu.memory_space<vmem>>, vector<128x128xbf16>
    %cst = arith.constant dense<0.000000e+00> : vector<128x128xf32>
    %6 = tpu.matmul %4, %5, %cst {dimension_numbers = #tpu.dot_dimension_numbers<[1], [0], [0], [1], [0, 0, 1, 1], [], []>} : vector<128x128xbf16>, vector<128x128xbf16>, vector<128x128xf32> -> vector<128x128xf32>
    %7 = arith.addf %3, %6 : vector<128x128xf32>
    %c0_6 = arith.constant 0 : index
    %c0_7 = arith.constant 0 : index
    %8 = vector.load %arg7[%c0_6, %c0_7] : memref<128x128xf32, #tpu.memory_space<vmem>>, vector<128x128xf32>
    tpu.vector_store %arg7[%c0_6, %c0_7], %7 {strides = array<i32>} : memref<128x128xf32, #tpu.memory_space<vmem>>, vector<128x128xf32>,
    %c0_i32_8 = arith.constant 0 : i32
    %9 = arith.cmpi eq, %arg1, %c0_i32_8 : i32
    %10 = arith.extui %9 : i1 to i32
    %c0_i32_9 = arith.constant 0 : i32
    %11 = arith.cmpi ne, %10, %c0_i32_9 : i32
    scf.if %11 {
      %c0_10 = arith.constant 0 : index
      %c0_11 = arith.constant 0 : index
      %12 = vector.load %arg7[%c0_10, %c0_11] : memref<128x128xf32, #tpu.memory_space<vmem>>, vector<128x128xf32>
      %c0_12 = arith.constant 0 : index
      %c0_13 = arith.constant 0 : index
      %13 = vector.load %arg4[%c0_12, %c0_13] : memref<128x1xf32, #tpu.memory_space<vmem>>, vector<128x1xf32>
      %14 = vector.broadcast %13 : vector<128x1xf32> to vector<128x128xf32>
      %15 = arith.mulf %12, %14 : vector<128x128xf32>
      %c0_14 = arith.constant 0 : index
      %c0_15 = arith.constant 0 : index
      %16 = vector.load %arg5[%c0_14, %c0_15] : memref<1x128xf32, #tpu.memory_space<vmem>>, vector<1x128xf32>
      %17 = vector.broadcast %16 : vector<1x128xf32> to vector<128x128xf32>
      %18 = arith.addf %15, %17 : vector<128x128xf32>
      %cst_16 = arith.constant 0.00999999977 : f32
      %19 = vector.broadcast %cst_16 : f32 to vector<128x128xf32>
      %20 = arith.addf %18, %19 : vector<128x128xf32>
      %c0_17 = arith.constant 0 : index
      %c0_18 = arith.constant 0 : index
      %21 = vector.load %arg6[%c0_17, %c0_18] : memref<128x128xf32, #tpu.memory_space<vmem>>, vector<128x128xf32>
      tpu.vector_store %arg6[%c0_17, %c0_18], %20 {strides = array<i32>} : memref<128x128xf32, #tpu.memory_space<vmem>>, vector<128x128xf32>,
    } else {
    }
    return
  }
  func.func @transform_0(%arg0: i32, %arg1: i32) -> (i32, i32) {
    %c0_i32 = arith.constant 0 : i32
    return %arg0, %arg1 : i32, i32
  }
  func.func @transform_1(%arg0: i32, %arg1: i32) -> (i32, i32) {
    %c0_i32 = arith.constant 0 : i32
    %c0_i32_0 = arith.constant 0 : i32
    return %arg1, %c0_i32 : i32, i32
  }
  func.func @transform_2(%arg0: i32, %arg1: i32) -> (i32, i32) {
    %c0_i32 = arith.constant 0 : i32
    %c0_i32_0 = arith.constant 0 : i32
    return %arg0, %c0_i32 : i32, i32
  }
  func.func @transform_3(%arg0: i32, %arg1: i32) -> (i32, i32) {
    %c0_i32 = arith.constant 0 : i32
    %c0_i32_0 = arith.constant 0 : i32
    %c0_i32_1 = arith.constant 0 : i32
    return %c0_i32, %c0_i32_0 : i32, i32
  }
  func.func @transform_4(%arg0: i32, %arg1: i32) -> (i32, i32) {
    %c0_i32 = arith.constant 0 : i32
    %c0_i32_0 = arith.constant 0 : i32
    return %arg0, %c0_i32 : i32, i32
  }
}

module attributes {stable_mosaic.version = 11 : i64} {
  func.func @_project_kernel(%arg0: i32, %arg1: memref<128x32xf32, #tpu.memory_space<vmem>>, %arg2: memref<32x128xf32, #tpu.memory_space<vmem>>, %arg3: memref<128x128xbf16, #tpu.memory_space<vmem>>) attributes {dimension_semantics = [#tpu.dimension_semantics<parallel>], iteration_bounds = array<i64: 1>, scalar_prefetch = 0 : i64, scratch_operands = 0 : i64, tpu.core_type = #tpu.core_type<tc>, window_params = [{transform_indices = @transform_0, window_bounds = array<i64: 128, 32>}, {pipeline_mode = #tpu.pipeline_mode<synchronous>, transform_indices = @transform_1, window_bounds = array<i64: 32, 128>}, {transform_indices = @transform_2, window_bounds = array<i64: 128, 128>}]} {
    %c0 = arith.constant 0 : index
    %c0_0 = arith.constant 0 : index
    %0 = vector.load %arg1[%c0, %c0_0] : memref<128x32xf32, #tpu.memory_space<vmem>>, vector<128x32xf32>
    %c0_1 = arith.constant 0 : index
    %c0_2 = arith.constant 0 : index
    %1 = vector.load %arg2[%c0_1, %c0_2] : memref<32x128xf32, #tpu.memory_space<vmem>>, vector<32x128xf32>
    %cst = arith.constant dense<0.000000e+00> : vector<128x128xf32>
    %2 = tpu.matmul %0, %1, %cst {dimension_numbers = #tpu.dot_dimension_numbers<[1], [0], [0], [1], [0, 0, 1, 1], [], []>} : vector<128x32xf32>, vector<32x128xf32>, vector<128x128xf32> -> vector<128x128xf32>
    %3 = arith.truncf %2 : vector<128x128xf32> to vector<128x128xbf16>
    %c0_3 = arith.constant 0 : index
    %c0_4 = arith.constant 0 : index
    %4 = vector.load %arg3[%c0_3, %c0_4] : memref<128x128xbf16, #tpu.memory_space<vmem>>, vector<128x128xbf16>
    tpu.vector_store %arg3[%c0_3, %c0_4], %3 {strides = array<i32>} : memref<128x128xbf16, #tpu.memory_space<vmem>>, vector<128x128xbf16>,
    return
  }
  func.func @transform_0(%arg0: i32) -> (i32, i32) {
    %c0_i32 = arith.constant 0 : i32
    %c0_i32_0 = arith.constant 0 : i32
    return %arg0, %c0_i32 : i32, i32
  }
  func.func @transform_1(%arg0: i32) -> (i32, i32) {
    %c0_i32 = arith.constant 0 : i32
    %c0_i32_0 = arith.constant 0 : i32
    %c0_i32_1 = arith.constant 0 : i32
    return %c0_i32, %c0_i32_0 : i32, i32
  }
  func.func @transform_2(%arg0: i32) -> (i32, i32) {
    %c0_i32 = arith.constant 0 : i32
    %c0_i32_0 = arith.constant 0 : i32
    return %arg0, %c0_i32 : i32, i32
  }
}

</mosaic_0001>

<bundles_post_ra>
// kernel: sage_conv.2
= control target key start
LH: loop header
LB: loop body
LE: loop exit
PB: predicated region body
PF: predicated region fallthrough
CT: control target
= control target key end

     0   :  { %vm31_vm0 = vcmask 261120   ;;  %s371_s1 = inlined_call_operand.vmem [shape: f32[32,128], index: 1, kind: input, shape index: {}]   ;;  %s372_s0 = inlined_call_operand.vmem [shape: f32[128,32], index: 0, kind: input, shape index: {}]   ;;  %s373_s2 = inlined_call_operand.vmem [shape: bf16[128,128], index: 2, kind: output, shape index: {}]  }
   0x1   :  { %v30_v0 = vld [vmem:[%s371_s1 + $0x18] sm:$0xff]  ;;  %v29_v1 = vld [vmem:[%s371_s1 + $0x10] sm:$0xff]  ;;  %v28_v2 = vld [vmem:[%s371_s1 + $0x8] sm:$0xff] }
   0x2   :  { %92 = vmatpush.msra.mxu0 %v30_v0  ;;  %244 = vmatpush.msra.mxu1 %v30_v0  ;;  %v27_v3 = vld [vmem:[%s371_s1] sm:$0xff]  ;;  %v12_v8 = vld [vmem:[%s372_s0 + $0x8] sm:$0xff]  ;;  %v13_v12 = vld [vmem:[%s372_s0 + $0x10] sm:$0xff] }
   0x3   :  { %245 = vmatpush.msra.mxu2 %v30_v0  ;;  %246 = vmatpush.msra.mxu3 %v30_v0  ;;  %v11_v4 = vld [vmem:[%s372_s0] sm:$0xff]  ;;  %v16_v9 = vld [vmem:[%s372_s0 + $0x28] sm:$0xff]  ;;  %v17_v13 = vld [vmem:[%s372_s0 + $0x30] sm:$0xff] }
   0x4   :  { %93 = vmatpush.msra.mxu0 %v29_v1  ;;  %247 = vmatpush.msra.mxu1 %v29_v1  ;;  %v15_v5 = vld [vmem:[%s372_s0 + $0x20] sm:$0xff]  ;;  %v20_v10 = vld [vmem:[%s372_s0 + $0x48] sm:$0xff]  ;;  %v21_v14 = vld [vmem:[%s372_s0 + $0x50] sm:$0xff] }
   0x5   :  { %248 = vmatpush.msra.mxu2 %v29_v1  ;;  %249 = vmatpush.msra.mxu3 %v29_v1  ;;  %v19_v6 = vld [vmem:[%s372_s0 + $0x40] sm:$0xff]  ;;  %v24_v11 = vld [vmem:[%s372_s0 + $0x68] sm:$0xff]  ;;  %v25_v15 = vld [vmem:[%s372_s0 + $0x70] sm:$0xff] }
   0x6   :  { %94 = vmatpush.msra.mxu0 %v28_v2  ;;  %250 = vmatpush.msra.mxu1 %v28_v2  ;;  %v23_v7 = vld [vmem:[%s372_s0 + $0x60] sm:$0xff]  ;;  %v14_v16 = vld [vmem:[%s372_s0 + $0x18] sm:$0xff] }
   0x7   :  { %251 = vmatpush.msra.mxu2 %v28_v2  ;;  %252 = vmatpush.msra.mxu3 %v28_v2  ;;  %v18_v17 = vld [vmem:[%s372_s0 + $0x38] sm:$0xff] }
   0x8   :  { %95 = vmatpush.msra.mxu0 %v27_v3  ;;  %253 = vmatpush.msra.mxu1 %v27_v3  ;;  %v22_v18 = vld [vmem:[%s372_s0 + $0x58] sm:$0xff] }
   0x9   :  { %254 = vmatpush.msra.mxu2 %v27_v3  ;;  %255 = vmatpush.msra.mxu3 %v27_v3  ;;  %v26_v19 = vld [vmem:[%s372_s0 + $0x78] sm:$0xff] }
   0xa   :  { %181 = vmatmul.msk.f32.vlgmr.msra.gmra.mxu0 %vm31_vm0, %v11_v4  ;;  %185 = vmatmul.msk.f32.vlgmr.msra.gmra.mxu1 %vm31_vm0, %v15_v5 }
   0xb   :  { %189 = vmatmul.msk.f32.vlgmr.msra.gmra.mxu2 %vm31_vm0, %v19_v6  ;;  %193 = vmatmul.msk.f32.vlgmr.msra.gmra.mxu3 %vm31_vm0, %v23_v7 }
  0x12   :  { %182 = vmatmul.msk.f32.gmra.mxu0 %vm31_vm0, %v12_v8  ;;  %186 = vmatmul.msk.f32.gmra.mxu1 %vm31_vm0, %v16_v9 }
  0x13   :  { %190 = vmatmul.msk.f32.gmra.mxu2 %vm31_vm0, %v20_v10  ;;  %194 = vmatmul.msk.f32.gmra.mxu3 %vm31_vm0, %v24_v11 }
  0x1a   :  { %183 = vmatmul.msk.f32.gmra.mxu0 %vm31_vm0, %v13_v12  ;;  %187 = vmatmul.msk.f32.gmra.mxu1 %vm31_vm0, %v17_v13 }
  0x1b   :  { %191 = vmatmul.msk.f32.gmra.mxu2 %vm31_vm0, %v21_v14  ;;  %195 = vmatmul.msk.f32.gmra.mxu3 %vm31_vm0, %v25_v15 }
  0x22   :  { %184 = vmatmul.msk.f32.gmra.mxu0 %vm31_vm0, %v14_v16  ;;  %188 = vmatmul.msk.f32.gmra.mxu1 %vm31_vm0, %v18_v17 }
  0x23   :  { %192 = vmatmul.msk.f32.gmra.mxu2 %vm31_vm0, %v22_v18  ;;  %196 = vmatmul.msk.f32.gmra.mxu3 %vm31_vm0, %v26_v19 }
  0x87   :  { %v97_v20 = vpop.f32.mrf.mxu0  ;;  %v109_v21 = vpop.f32.mrf.mxu1 }
  0x8e   :  { %v121_v22 = vpop.f32.mrf.mxu2  ;;  %v133_v23 = vpop.f32.mrf.mxu3 }
  0x8f   :  { %v100_v24 = vpop.f32.mrf.mxu0  ;;  %v112_v25 = vpop.f32.mrf.mxu1 }
  0x90   :  { %v200_v26 = vpack.c.bf16 %v100_v24, %v97_v20  ;;  %v210_v27 = vpack.c.bf16 %v112_v25, %v109_v21 }
  0x92   :  { %201 = vst [vmem:[%s373_s2] sm:$0xff] %v200_v26  }
  0x93   :  { %238 = vst [vmem:[%s373_s2 + $0x10] sm:$0xff] %v210_v27  }
  0x96   :  { %v124_v28 = vpop.f32.mrf.mxu2  ;;  %v136_v29 = vpop.f32.mrf.mxu3 }
  0x97   :  { %v220_v30 = vpack.c.bf16 %v124_v28, %v121_v22  ;;  %v230_v31 = vpack.c.bf16 %v136_v29, %v133_v23  ;;  %v103_v32 = vpop.f32.mrf.mxu0  ;;  %v115_v33 = vpop.f32.mrf.mxu1 }
  0x99   :  { %240 = vst [vmem:[%s373_s2 + $0x20] sm:$0xff] %v220_v30  }
  0x9a   :  { %242 = vst [vmem:[%s373_s2 + $0x30] sm:$0xff] %v230_v31  }
  0x9e   :  { %v127_v34 = vpop.f32.mrf.mxu2  ;;  %v139_v35 = vpop.f32.mrf.mxu3 }
  0x9f   :  { %v106_v36 = vpop.f32.mrf.mxu0  ;;  %v118_v37 = vpop.f32.mrf.mxu1 }
  0xa0   :  { %v205_v38 = vpack.c.bf16 %v106_v36, %v103_v32  ;;  %v215_v39 = vpack.c.bf16 %v118_v37, %v115_v33 }
  0xa2   :  { %237 = vst [vmem:[%s373_s2 + $0x8] sm:$0xff] %v205_v38  }
  0xa3   :  { %239 = vst [vmem:[%s373_s2 + $0x18] sm:$0xff] %v215_v39  }
  0xa6   :  { %v130_v40 = vpop.f32.mrf.mxu2  ;;  %v142_v41 = vpop.f32.mrf.mxu3 }
  0xa7   :  { %v225_v42 = vpack.c.bf16 %v130_v40, %v127_v34  ;;  %v235_v43 = vpack.c.bf16 %v142_v41, %v139_v35 }
  0xa9   :  { %241 = vst [vmem:[%s373_s2 + $0x28] sm:$0xff] %v225_v42  }
  0xaa   :  { %243 = vst [vmem:[%s373_s2 + $0x38] sm:$0xff] %v235_v43  }

// kernel: sage_conv.3
= control target key start
LH: loop header
LB: loop body
LE: loop exit
PB: predicated region body
PF: predicated region fallthrough
CT: control target
= control target key end

     0   :  { %v558_v0 = vmov 0   ;;  %s755_s2 = inlined_call_operand.vmem [shape: f32[128,1], index: 2, kind: input, shape index: {}]   ;;  %s756_s1 = inlined_call_operand.vmem [shape: bf16[128,128], index: 1, kind: input, shape index: {}]   ;;  %s757_s0 = inlined_call_operand.vmem [shape: bf16[128,128], index: 0, kind: input, shape index: {}]   ;;  %s758_s3 = inlined_call_operand.vmem [shape: f32[1,128], index: 3, kind: input, shape index: {}]   ;;  %s759_s4 = inlined_call_operand.vmem [shape: f32[128,128], index: 4, kind: output, shape index: {}]  }
   0x1   :  { %554 = vset.pattern.permute.xlu0 %v558_v0  ;;  %v281_v1 = vld [vmem:[%s755_s2] sm:$0xff]  ;;  %v528_v2 = vld [vmem:[%s756_s1 + $0x38] sm:$0xff]  ;;  %555 = vset.pattern.permute.xlu1 %v558_v0  ;;  %v283_v3 = vld [vmem:[%s755_s2 + $0x10] sm:$0xff] }
   0x2   :  { %299 = vperm.xlu0 %554, %v281_v1   ;;  %556 = vset.pattern.permute.xlu2 %v558_v0  ;;  %v527_v4 = vld [vmem:[%s756_s1 + $0x30] sm:$0xff]  ;;  %v282_v5 = vld [vmem:[%s755_s2 + $0x8] sm:$0xff]  ;;  %v285_v7 = vld [vmem:[%s755_s2 + $0x20] sm:$0xff] }
   0x3   :  { %181 = vmatpush.bf16.msra.mxu0 %v528_v2  ;;  %529 = vmatpush.bf16.msra.mxu1 %v528_v2  ;;  %v526_v6 = vld [vmem:[%s756_s1 + $0x28] sm:$0xff]  ;;  %v284_v8 = vld [vmem:[%s755_s2 + $0x18] sm:$0xff]  ;;  %v525_v9 = vld [vmem:[%s756_s1 + $0x20] sm:$0xff] }
   0x4   :  { %530 = vmatpush.bf16.msra.mxu2 %v528_v2  ;;  %531 = vmatpush.bf16.msra.mxu3 %v528_v2  ;;  %v286_v10 = vld [vmem:[%s755_s2 + $0x28] sm:$0xff]  ;;  %v287_v11 = vld [vmem:[%s755_s2 + $0x30] sm:$0xff]  ;;  %v524_v12 = vld [vmem:[%s756_s1 + $0x18] sm:$0xff] }
   0x5   :  { %309 = vperm.xlu1 %555, %v283_v3   ;;  %319 = vperm.xlu2 %556, %v285_v7   ;;  %v288_v13 = vld [vmem:[%s755_s2 + $0x38] sm:$0xff]  ;;  %v523_v14 = vld [vmem:[%s756_s1 + $0x10] sm:$0xff]  ;;  %v289_v15 = vld [vmem:[%s755_s2 + $0x40] sm:$0xff] }
   0x6   :  { %v290_v16 = vld [vmem:[%s755_s2 + $0x48] sm:$0xff]  ;;  %v291_v18 = vld [vmem:[%s755_s2 + $0x50] sm:$0xff]  ;;  %v521_v19 = vld [vmem:[%s756_s1] sm:$0xff] }
   0x7   :  { %182 = vmatpush.bf16.msra.mxu0 %v527_v4  ;;  %532 = vmatpush.bf16.msra.mxu1 %v527_v4  ;;  %v522_v17 = vld [vmem:[%s756_s1 + $0x8] sm:$0xff]  ;;  %v513_v20 = vld [vmem:[%s757_s0] sm:$0xff]  ;;  %v292_v21 = vld [vmem:[%s755_s2 + $0x58] sm:$0xff] }
   0x8   :  { %533 = vmatpush.bf16.msra.mxu2 %v527_v4  ;;  %534 = vmatpush.bf16.msra.mxu3 %v527_v4  ;;  %v293_v22 = vld [vmem:[%s755_s2 + $0x60] sm:$0xff]  ;;  %v515_v23 = vld [vmem:[%s757_s0 + $0x10] sm:$0xff]  ;;  %v294_v26 = vld [vmem:[%s755_s2 + $0x68] sm:$0xff] }
   0x9   :  { %v517_v24 = vld [vmem:[%s757_s0 + $0x20] sm:$0xff]  ;;  %v519_v25 = vld [vmem:[%s757_s0 + $0x30] sm:$0xff]  ;;  %v296_v28 = vld [vmem:[%s755_s2 + $0x78] sm:$0xff] }
   0xa   :  { %304 = vperm.xlu0 %554, %v282_v5   ;;  %v295_v27 = vld [vmem:[%s755_s2 + $0x70] sm:$0xff]  ;;  %v514_v29 = vld [vmem:[%s757_s0 + $0x8] sm:$0xff]  ;;  %v516_v30 = vld [vmem:[%s757_s0 + $0x18] sm:$0xff] }
   0xb   :  { %183 = vmatpush.bf16.msra.mxu0 %v526_v6  ;;  %535 = vmatpush.bf16.msra.mxu1 %v526_v6  ;;  %v518_v31 = vld [vmem:[%s757_s0 + $0x28] sm:$0xff]  ;;  %v520_v32 = vld [vmem:[%s757_s0 + $0x38] sm:$0xff]  ;;  %v687_v42 = vld [vmem:[%s758_s3] ss:$0 sm:$0xff] }
   0xc   :  { %536 = vmatpush.bf16.msra.mxu2 %v526_v6  ;;  %537 = vmatpush.bf16.msra.mxu3 %v526_v6 }
   0xd   :  { %314 = vperm.xlu1 %555, %v284_v8   ;;  %324 = vperm.xlu2 %556, %v286_v10  }
   0xf   :  { %184 = vmatpush.bf16.msra.mxu0 %v525_v9  ;;  %538 = vmatpush.bf16.msra.mxu1 %v525_v9 }
  0x10   :  { %539 = vmatpush.bf16.msra.mxu2 %v525_v9  ;;  %540 = vmatpush.bf16.msra.mxu3 %v525_v9 }
  0x12   :  { %329 = vperm.xlu0 %554, %v287_v11  }
  0x13   :  { %185 = vmatpush.bf16.msra.mxu0 %v524_v12  ;;  %541 = vmatpush.bf16.msra.mxu1 %v524_v12 }
  0x14   :  { %542 = vmatpush.bf16.msra.mxu2 %v524_v12  ;;  %543 = vmatpush.bf16.msra.mxu3 %v524_v12 }
  0x15   :  { %334 = vperm.xlu1 %555, %v288_v13   ;;  %339 = vperm.xlu2 %556, %v289_v15  }
  0x17   :  { %186 = vmatpush.bf16.msra.mxu0 %v523_v14  ;;  %544 = vmatpush.bf16.msra.mxu1 %v523_v14 }
  0x18   :  { %545 = vmatpush.bf16.msra.mxu2 %v523_v14  ;;  %546 = vmatpush.bf16.msra.mxu3 %v523_v14 }
  0x1a   :  { %344 = vperm.xlu0 %554, %v290_v16  }
  0x1b   :  { %187 = vmatpush.bf16.msra.mxu0 %v522_v17  ;;  %547 = vmatpush.bf16.msra.mxu1 %v522_v17 }
  0x1c   :  { %548 = vmatpush.bf16.msra.mxu2 %v522_v17  ;;  %549 = vmatpush.bf16.msra.mxu3 %v522_v17 }
  0x1d   :  { %349 = vperm.xlu1 %555, %v291_v18   ;;  %354 = vperm.xlu2 %556, %v292_v21  }
  0x1f   :  { %188 = vmatpush.bf16.msra.mxu0 %v521_v19  ;;  %550 = vmatpush.bf16.msra.mxu1 %v521_v19 }
  0x20   :  { %551 = vmatpush.bf16.msra.mxu2 %v521_v19  ;;  %552 = vmatpush.bf16.msra.mxu3 %v521_v19 }
  0x22   :  { %359 = vperm.xlu0 %554, %v293_v22   ;;  %189 = vmatmul.bf16.vlgmr.msra.gmra.mxu0 %v513_v20 }
  0x23   :  { %199 = vmatmul.bf16.vlgmr.msra.gmra.mxu1 %v515_v23  ;;  %209 = vmatmul.bf16.vlgmr.msra.gmra.mxu2 %v517_v24 }
  0x24   :  { %219 = vmatmul.bf16.vlgmr.msra.gmra.mxu3 %v519_v25 }
  0x25   :  { %364 = vperm.xlu1 %555, %v294_v26   ;;  %369 = vperm.xlu2 %556, %v295_v27  }
  0x2a   :  { %374 = vperm.xlu0 %554, %v296_v28  }
  0x32   :  { %194 = vmatmul.bf16.gmra.mxu0 %v514_v29 }
  0x33   :  { %204 = vmatmul.bf16.gmra.mxu1 %v516_v30  ;;  %214 = vmatmul.bf16.gmra.mxu2 %v518_v31 }
  0x34   :  { %224 = vmatmul.bf16.gmra.mxu3 %v520_v32 }
  0x5f   :  { %v320_v36 = vpop.permute.xlu2 %319 }
  0x67   :  { %v325_v39 = vpop.permute.xlu2 %324 }
  0x6f   :  { %v340_v47 = vpop.permute.xlu2 %339 }
  0x74   :  { %v300_v33 = vpop.permute.xlu0 %299 }
  0x77   :  { %v310_v34 = vpop.permute.xlu1 %309  ;;  %v355_v3 = vpop.permute.xlu2 %354 }
  0x7c   :  { %v305_v35 = vpop.permute.xlu0 %304 }
  0x7f   :  { %v680_v37 = vpop.permute.xlu1 %314  ;;  %v370_v24 = vpop.permute.xlu2 %369 }
  0x84   :  { %v330_v38 = vpop.permute.xlu0 %329 }
  0x87   :  { %v682_v40 = vpop.permute.xlu1 %334 }
  0x8c   :  { %v345_v41 = vpop.permute.xlu0 %344 }
  0x8f   :  { %v350_v50 = vpop.permute.xlu1 %349 }
  0x94   :  { %v360_v53 = vpop.permute.xlu0 %359 }
  0x97   :  { %v365_v7 = vpop.permute.xlu1 %364 }
  0x9f   :  { %v190_v43 = vpop.f32.mrf.mxu0 }
  0xa0   :  { %v377_v44 = vmul.f32 %v300_v33, %v190_v43  ;;  %v200_v45 = vpop.f32.mrf.mxu1 }
  0xa1   :  { %v381_v46 = vmul.f32 %v320_v36, %v200_v45 }
  0xa2   :  { %v397_v48 = vadd.f32 %v687_v42, %v377_v44 }
  0xa3   :  { %v401_v49 = vadd.f32 %v687_v42, %v381_v46 }
  0xa4   :  { %v413_v51 = vadd.f32 0.01, %v397_v48 }
  0xa5   :  { %v417_v52 = vadd.f32 0.01, %v401_v49 }
  0xa6   :  { %429 = vst [vmem:[%s759_s4] sm:$0xff] %v413_v51  ;;  %v210_v54 = vpop.f32.mrf.mxu2 }
  0xa7   :  { %433 = vst [vmem:[%s759_s4 + $0x20] sm:$0xff] %v417_v52  ;;  %v385_v55 = vmul.f32 %v340_v47, %v210_v54  ;;  %v220_v56 = vpop.f32.mrf.mxu3  ;;  %v192_v57 = vpop.f32.mrf.mxu0 }
  0xa8   :  { %v389_v58 = vmul.f32 %v360_v53, %v220_v56  ;;  %v378_v59 = vmul.f32 %v305_v35, %v192_v57  ;;  %v202_v60 = vpop.f32.mrf.mxu1 }
  0xa9   :  { %v405_v61 = vadd.f32 %v687_v42, %v385_v55  ;;  %v382_v62 = vmul.f32 %v325_v39, %v202_v60 }
  0xaa   :  { %v409_v63 = vadd.f32 %v687_v42, %v389_v58  ;;  %v398_v0 = vadd.f32 %v687_v42, %v378_v59 }
  0xab   :  { %v421_v1 = vadd.f32 0.01, %v405_v61  ;;  %v402_v2 = vadd.f32 %v687_v42, %v382_v62 }
  0xac   :  { %v425_v4 = vadd.f32 0.01, %v409_v63  ;;  %v414_v5 = vadd.f32 0.01, %v398_v0 }
  0xad   :  { %437 = vst [vmem:[%s759_s4 + $0x40] sm:$0xff] %v421_v1  ;;  %v418_v6 = vadd.f32 0.01, %v402_v2 }
  0xae   :  { %441 = vst [vmem:[%s759_s4 + $0x60] sm:$0xff] %v425_v4  ;;  %v212_v8 = vpop.f32.mrf.mxu2 }
  0xaf   :  { %430 = vst [vmem:[%s759_s4 + $0x8] sm:$0xff] %v414_v5  ;;  %v386_v9 = vmul.f32 %v345_v41, %v212_v8  ;;  %v222_v10 = vpop.f32.mrf.mxu3  ;;  %v195_v11 = vpop.f32.mrf.mxu0 }
  0xb0   :  { %434 = vst [vmem:[%s759_s4 + $0x28] sm:$0xff] %v418_v6  ;;  %v390_v12 = vmul.f32 %v365_v7, %v222_v10  ;;  %v379_v13 = vmul.f32 %v310_v34, %v195_v11  ;;  %v205_v14 = vpop.f32.mrf.mxu1 }
  0xb1   :  { %v406_v15 = vadd.f32 %v687_v42, %v386_v9  ;;  %v383_v16 = vmul.f32 %v330_v38, %v205_v14 }
  0xb2   :  { %v410_v17 = vadd.f32 %v687_v42, %v390_v12  ;;  %v399_v18 = vadd.f32 %v687_v42, %v379_v13 }
  0xb3   :  { %v422_v19 = vadd.f32 0.01, %v406_v15  ;;  %v403_v20 = vadd.f32 %v687_v42, %v383_v16 }
  0xb4   :  { %v426_v21 = vadd.f32 0.01, %v410_v17  ;;  %v415_v22 = vadd.f32 0.01, %v399_v18 }
  0xb5   :  { %438 = vst [vmem:[%s759_s4 + $0x48] sm:$0xff] %v422_v19  ;;  %v419_v23 = vadd.f32 0.01, %v403_v20 }
  0xb6   :  { %442 = vst [vmem:[%s759_s4 + $0x68] sm:$0xff] %v426_v21  ;;  %v215_v25 = vpop.f32.mrf.mxu2 }
  0xb7   :  { %431 = vst [vmem:[%s759_s4 + $0x10] sm:$0xff] %v415_v22  ;;  %v387_v26 = vmul.f32 %v350_v50, %v215_v25  ;;  %v225_v27 = vpop.f32.mrf.mxu3  ;;  %v197_v28 = vpop.f32.mrf.mxu0 }
  0xb8   :  { %435 = vst [vmem:[%s759_s4 + $0x30] sm:$0xff] %v419_v23  ;;  %v391_v29 = vmul.f32 %v370_v24, %v225_v27  ;;  %v380_v30 = vmul.f32 %v680_v37, %v197_v28  ;;  %v207_v31 = vpop.f32.mrf.mxu1 }
  0xb9   :  { %v407_v32 = vadd.f32 %v687_v42, %v387_v26  ;;  %v384_v33 = vmul.f32 %v682_v40, %v207_v31  ;;  %v375_v40 = vpop.permute.xlu0 %374 }
  0xba   :  { %v411_v34 = vadd.f32 %v687_v42, %v391_v29  ;;  %v400_v35 = vadd.f32 %v687_v42, %v380_v30 }
  0xbb   :  { %v423_v36 = vadd.f32 0.01, %v407_v32  ;;  %v404_v38 = vadd.f32 %v687_v42, %v384_v33 }
  0xbc   :  { %v427_v39 = vadd.f32 0.01, %v411_v34  ;;  %v416_v41 = vadd.f32 0.01, %v400_v35 }
  0xbd   :  { %439 = vst [vmem:[%s759_s4 + $0x50] sm:$0xff] %v423_v36  ;;  %v420_v43 = vadd.f32 0.01, %v404_v38 }
  0xbe   :  { %443 = vst [vmem:[%s759_s4 + $0x70] sm:$0xff] %v427_v39  ;;  %v217_v37 = vpop.f32.mrf.mxu2 }
  0xbf   :  { %432 = vst [vmem:[%s759_s4 + $0x18] sm:$0xff] %v416_v41  ;;  %v388_v44 = vmul.f32 %v355_v3, %v217_v37  ;;  %v227_v45 = vpop.f32.mrf.mxu3 }
  0xc0   :  { %436 = vst [vmem:[%s759_s4 + $0x38] sm:$0xff] %v420_v43  ;;  %v392_v46 = vmul.f32 %v375_v40, %v227_v45 }
  0xc1   :  { %v408_v47 = vadd.f32 %v687_v42, %v388_v44 }
  0xc2   :  { %v412_v48 = vadd.f32 %v687_v42, %v392_v46 }
  0xc3   :  { %v424_v49 = vadd.f32 0.01, %v408_v47 }
  0xc4   :  { %v428_v50 = vadd.f32 0.01, %v412_v48 }
  0xc5   :  { %440 = vst [vmem:[%s759_s4 + $0x58] sm:$0xff] %v424_v49 }
  0xc6   :  { %444 = vst [vmem:[%s759_s4 + $0x78] sm:$0xff] %v428_v50 }

</bundles_post_ra>
